<compile_context>
chip_gen: v7x
topology: tpu7x:2x2x1
jax: 0.10.0
libtpu: 0.0.40
codegen_flags: <defaults>
</compile_context>

<pallas_src>
import jax
import jax.numpy as jnp
from jax.experimental import pallas as pl
from jax.experimental.pallas import tpu as pltpu


def _camera_init_loss_kernel(par_ref, data_ref, out_ref):
    # par_ref : SMEM f32[15*B + 2]
    #           = [rot(B*9) | transl(B*3) | center(B*2) | tz_est(B) | focal | depth_w^2]
    # data_ref: VMEM f32[B, 6, J]   sublane rows: px, py, pz, gt_x, gt_y, weight
    #           (weight = index_select multiplicity * data_weight**2)
    # out_ref : SMEM f32[1, 3]      = [total_loss, joint_loss, depth_loss]
    B = data_ref.shape[0]
    J = data_ref.shape[2]

    # Static offsets into the packed scalar-parameter buffer.
    ROT, TRA, CEN, TZE = 0, 9 * B, 12 * B, 14 * B
    focal = par_ref[15 * B]
    depth_w2 = par_ref[15 * B + 1]

    err_acc = jnp.zeros((1, J), jnp.float32)
    depth_acc = 0.0
    for b in range(B):                          # B is small & static -> unroll
        px = data_ref[b, 0:1, :]                # (1, J)
        py = data_ref[b, 1:2, :]
        pz = data_ref[b, 2:3, :]
        gx = data_ref[b, 3:4, :]
        gy = data_ref[b, 4:5, :]

        r00 = par_ref[ROT + b * 9 + 0]
        r01 = par_ref[ROT + b * 9 + 1]
        r02 = par_ref[ROT + b * 9 + 2]
        r10 = par_ref[ROT + b * 9 + 3]
        r11 = par_ref[ROT + b * 9 + 4]
        r12 = par_ref[ROT + b * 9 + 5]
        r20 = par_ref[ROT + b * 9 + 6]
        r21 = par_ref[ROT + b * 9 + 7]
        r22 = par_ref[ROT + b * 9 + 8]
        tx = par_ref[TRA + b * 3 + 0]
        ty = par_ref[TRA + b * 3 + 1]
        tz = par_ref[TRA + b * 3 + 2]
        cx = par_ref[CEN + b * 2 + 0]
        cy = par_ref[CEN + b * 2 + 1]
        tz_est = par_ref[TZE + b]

        # Rotation + translation via scalar-broadcast VPU FMAs (3x3 is far too
        # small for the MXU on any TPU generation).
        cam_x = r00 * px + r01 * py + r02 * pz + tx
        cam_y = r10 * px + r11 * py + r12 * pz + ty
        cam_z = r20 * px + r21 * py + r22 * pz + tz

        # EUP approximate reciprocal + one Newton refinement (~f32 accuracy,
        # keeps the VPU divide sequence off the critical path).
        rcp = pl.reciprocal(cam_z, approx=True)
        rcp = rcp * (2.0 - cam_z * rcp)

        u = focal * cam_x * rcp + cx
        v = focal * cam_y * rcp + cy

        du = gx - u
        dv = gy - v
        err_acc = err_acc + du * du + dv * dv

        dzc = tz - tz_est                        # pure scalar (SMEM) math
        depth_acc = depth_acc + dzc * dzc

    # Fused gather + data_weight**2: weight row is identical across batches.
    w = data_ref[0, 5:6, :]                      # (1, J)
    joint_loss = jnp.sum(err_acc * w)            # full reduce -> scalar
    depth_loss = depth_acc * depth_w2

    out_ref[0, 0] = joint_loss + depth_loss
    out_ref[0, 1] = joint_loss
    out_ref[0, 2] = depth_loss


@jax.jit
def smplify_camera_init_loss(joints, gt_joints, init_joints_idxs, rotation,
                             translation, center, focal_length,
                             trans_estimation, data_weight=1.0,
                             depth_loss_weight=100.0):
    if trans_estimation is None:
        # Depth term disabled in the original module -> make it exactly zero.
        trans_estimation = translation
        depth_loss_weight = 0.0

    B, J, _ = joints.shape
    f32 = jnp.float32

    def _f32(x):
        x = jnp.asarray(x)
        return x if x.dtype == f32 else x.astype(f32)

    # Joint-selection multiplicity (torch.index_select incl. duplicates),
    # pre-scaled by data_weight**2 -- computed at trace/fusion time, not in
    # the kernel.
    idxs = jnp.asarray(init_joints_idxs, jnp.int32)
    dw = jnp.asarray(data_weight, f32)
    weights = jnp.zeros((J,), f32).at[idxs].add(1.0) * (dw * dw)        # (J,)

    # Single stacked VMEM input: coordinate/gt/weight rows on sublanes,
    # joint axis lane-dense on the last dim.
    pts = jnp.transpose(_f32(joints), (0, 2, 1))                        # (B, 3, J)
    gt = jnp.transpose(_f32(gt_joints), (0, 2, 1))                      # (B, 2, J)
    w_row = jnp.broadcast_to(weights[None, None, :], (B, 1, J))         # (B, 1, J)
    data = jnp.concatenate([pts, gt, w_row], axis=1)                    # (B, 6, J)

    # Single flat SMEM scalar buffer (1-D, long axis last -> minimal padding).
    dlw = jnp.asarray(depth_loss_weight, f32)
    params = jnp.concatenate([
        _f32(rotation).reshape(B * 9),
        _f32(translation).reshape(B * 3),
        _f32(center).reshape(B * 2),
        _f32(trans_estimation)[:, 2].reshape(B),
        jnp.asarray(focal_length, f32).reshape(1),
        (dlw * dlw).reshape(1),
    ])                                                                  # (15*B + 2,)

    smem = pl.BlockSpec(memory_space=pltpu.MemorySpace.SMEM)
    vmem = pl.BlockSpec(memory_space=pltpu.MemorySpace.VMEM)

    out = pl.pallas_call(
        _camera_init_loss_kernel,
        out_shape=jax.ShapeDtypeStruct((1, 3), f32),
        in_specs=[smem, vmem],
        out_specs=smem,
    )(params, data)

    return {'total_loss': out[0, 0],
            'joint_loss': out[0, 1],
            'depth_loss': out[0, 2]}


def _reference_loss(joints, gt_joints, init_joints_idxs, rotation, translation,
                    center, focal_length, trans_estimation, data_weight=1.0,
                    depth_loss_weight=100.0):
    sel_joints = jnp.take(joints, init_joints_idxs, axis=1)
    sel_gt = jnp.take(gt_joints, init_joints_idxs, axis=1)
    cam = jnp.einsum('bki,bji->bjk', rotation, sel_joints) + translation[:, None, :]
    img = focal_length * cam[..., :2] / cam[..., 2:3] + center[:, None, :]
    joint_loss = jnp.sum((sel_gt - img) ** 2) * data_weight ** 2
    depth_loss = depth_loss_weight ** 2 * jnp.sum(
        (translation[:, 2] - trans_estimation[:, 2]) ** 2)
    return {'total_loss': joint_loss + depth_loss,
            'joint_loss': joint_loss,
            'depth_loss': depth_loss}


if __name__ == "__main__":
    key = jax.random.PRNGKey(0)
    k1, k2, k3 = jax.random.split(key, 3)

    B, J = 2, 25                       # batch, total joints (OpenPose-like)
    joints = jax.random.normal(k1, (B, J, 3), jnp.float32) * 0.3        # 3D joints
    gt_joints = jax.random.normal(k2, (B, J, 2), jnp.float32) * 50.0 + 128.0
    init_joints_idxs = jnp.array([2, 5, 9, 12, 8, 1, 16, 17], jnp.int32)

    # camera parameters (deterministic, synthetic) — use a non-trivial rotation
    # so the in-kernel rotation math is exercised.
    theta = jnp.array([0.1, -0.2], jnp.float32)
    c, s = jnp.cos(theta), jnp.sin(theta)
    zeros, ones = jnp.zeros_like(theta), jnp.ones_like(theta)
    rotation = jnp.stack([
        jnp.stack([c, -s, zeros], axis=-1),
        jnp.stack([s, c, zeros], axis=-1),
        jnp.stack([zeros, zeros, ones], axis=-1)], axis=1)              # (B, 3, 3)
    translation = jnp.concatenate(
        [jax.random.normal(k3, (B, 2), jnp.float32) * 0.1,
         jnp.full((B, 1), 2.5, jnp.float32)], axis=1)
    center = jnp.full((B, 2), 128.0, jnp.float32)
    focal_length = 500.0
    trans_estimation = jnp.concatenate(
        [jnp.zeros((B, 2), jnp.float32),
         jnp.full((B, 1), 2.2, jnp.float32)], axis=1)

    out = smplify_camera_init_loss(joints, gt_joints, init_joints_idxs,
                                   rotation, translation, center, focal_length,
                                   trans_estimation)
    out = jax.block_until_ready(out)

    ref = _reference_loss(joints, gt_joints, init_joints_idxs, rotation,
                          translation, center, focal_length, trans_estimation)

    for name in ('total_loss', 'joint_loss', 'depth_loss'):
        assert jnp.allclose(out[name], ref[name], rtol=1e-4, atol=1e-2), (
            name, out[name], ref[name])

    print("KERNEL_OK")
</pallas_src>

<mosaic_0001>
module attributes {stable_mosaic.version = 11 : i64} {
  func.func @_camera_init_loss_kernel(%arg0: memref<32xf32, #tpu.memory_space<smem>>, %arg1: memref<2x6x25xf32, #tpu.memory_space<vmem>>, %arg2: memref<1x3xf32, #tpu.memory_space<smem>>) attributes {dimension_semantics = [], scalar_prefetch = 0 : i64, scratch_operands = 0 : i64, tpu.core_type = #tpu.core_type<tc>} {
    %c30 = arith.constant 30 : index
    %0 = memref.load %arg0[%c30] : memref<32xf32, #tpu.memory_space<smem>>
    %c31 = arith.constant 31 : index
    %1 = memref.load %arg0[%c31] : memref<32xf32, #tpu.memory_space<smem>>
    %cst = arith.constant 0.000000e+00 : f32
    %2 = vector.broadcast %cst : f32 to vector<1x25xf32>
    %c0 = arith.constant 0 : index
    %c0_0 = arith.constant 0 : index
    %c0_1 = arith.constant 0 : index
    %3 = vector.load %arg1[%c0, %c0_0, %c0_1] : memref<2x6x25xf32, #tpu.memory_space<vmem>>, vector<1x1x25xf32>
    %4 = vector.shape_cast %3 : vector<1x1x25xf32> to vector<1x25xf32>
    %c0_2 = arith.constant 0 : index
    %c1 = arith.constant 1 : index
    %c0_3 = arith.constant 0 : index
    %5 = vector.load %arg1[%c0_2, %c1, %c0_3] : memref<2x6x25xf32, #tpu.memory_space<vmem>>, vector<1x1x25xf32>
    %6 = vector.shape_cast %5 : vector<1x1x25xf32> to vector<1x25xf32>
    %c0_4 = arith.constant 0 : index
    %c2 = arith.constant 2 : index
    %c0_5 = arith.constant 0 : index
    %7 = vector.load %arg1[%c0_4, %c2, %c0_5] : memref<2x6x25xf32, #tpu.memory_space<vmem>>, vector<1x1x25xf32>
    %8 = vector.shape_cast %7 : vector<1x1x25xf32> to vector<1x25xf32>
    %c0_6 = arith.constant 0 : index
    %c3 = arith.constant 3 : index
    %c0_7 = arith.constant 0 : index
    %9 = vector.load %arg1[%c0_6, %c3, %c0_7] : memref<2x6x25xf32, #tpu.memory_space<vmem>>, vector<1x1x25xf32>
    %10 = vector.shape_cast %9 : vector<1x1x25xf32> to vector<1x25xf32>
    %c0_8 = arith.constant 0 : index
    %c4 = arith.constant 4 : index
    %c0_9 = arith.constant 0 : index
    %11 = vector.load %arg1[%c0_8, %c4, %c0_9] : memref<2x6x25xf32, #tpu.memory_space<vmem>>, vector<1x1x25xf32>
    %12 = vector.shape_cast %11 : vector<1x1x25xf32> to vector<1x25xf32>
    %c0_10 = arith.constant 0 : index
    %13 = memref.load %arg0[%c0_10] : memref<32xf32, #tpu.memory_space<smem>>
    %c1_11 = arith.constant 1 : index
    %14 = memref.load %arg0[%c1_11] : memref<32xf32, #tpu.memory_space<smem>>
    %c2_12 = arith.constant 2 : index
    %15 = memref.load %arg0[%c2_12] : memref<32xf32, #tpu.memory_space<smem>>
    %c3_13 = arith.constant 3 : index
    %16 = memref.load %arg0[%c3_13] : memref<32xf32, #tpu.memory_space<smem>>
    %c4_14 = arith.constant 4 : index
    %17 = memref.load %arg0[%c4_14] : memref<32xf32, #tpu.memory_space<smem>>
    %c5 = arith.constant 5 : index
    %18 = memref.load %arg0[%c5] : memref<32xf32, #tpu.memory_space<smem>>
    %c6 = arith.constant 6 : index
    %19 = memref.load %arg0[%c6] : memref<32xf32, #tpu.memory_space<smem>>
    %c7 = arith.constant 7 : index
    %20 = memref.load %arg0[%c7] : memref<32xf32, #tpu.memory_space<smem>>
    %c8 = arith.constant 8 : index
    %21 = memref.load %arg0[%c8] : memref<32xf32, #tpu.memory_space<smem>>
    %c18 = arith.constant 18 : index
    %22 = memref.load %arg0[%c18] : memref<32xf32, #tpu.memory_space<smem>>
    %c19 = arith.constant 19 : index
    %23 = memref.load %arg0[%c19] : memref<32xf32, #tpu.memory_space<smem>>
    %c20 = arith.constant 20 : index
    %24 = memref.load %arg0[%c20] : memref<32xf32, #tpu.memory_space<smem>>
    %c24 = arith.constant 24 : index
    %25 = memref.load %arg0[%c24] : memref<32xf32, #tpu.memory_space<smem>>
    %c25 = arith.constant 25 : index
    %26 = memref.load %arg0[%c25] : memref<32xf32, #tpu.memory_space<smem>>
    %c28 = arith.constant 28 : index
    %27 = memref.load %arg0[%c28] : memref<32xf32, #tpu.memory_space<smem>>
    %28 = vector.broadcast %13 : f32 to vector<1x25xf32>
    %29 = arith.mulf %28, %4 : vector<1x25xf32>
    %30 = vector.broadcast %14 : f32 to vector<1x25xf32>
    %31 = arith.mulf %30, %6 : vector<1x25xf32>
    %32 = arith.addf %29, %31 : vector<1x25xf32>
    %33 = vector.broadcast %15 : f32 to vector<1x25xf32>
    %34 = arith.mulf %33, %8 : vector<1x25xf32>
    %35 = arith.addf %32, %34 : vector<1x25xf32>
    %36 = vector.broadcast %22 : f32 to vector<1x25xf32>
    %37 = arith.addf %35, %36 : vector<1x25xf32>
    %38 = vector.broadcast %16 : f32 to vector<1x25xf32>
    %39 = arith.mulf %38, %4 : vector<1x25xf32>
    %40 = vector.broadcast %17 : f32 to vector<1x25xf32>
    %41 = arith.mulf %40, %6 : vector<1x25xf32>
    %42 = arith.addf %39, %41 : vector<1x25xf32>
    %43 = vector.broadcast %18 : f32 to vector<1x25xf32>
    %44 = arith.mulf %43, %8 : vector<1x25xf32>
    %45 = arith.addf %42, %44 : vector<1x25xf32>
    %46 = vector.broadcast %23 : f32 to vector<1x25xf32>
    %47 = arith.addf %45, %46 : vector<1x25xf32>
    %48 = vector.broadcast %19 : f32 to vector<1x25xf32>
    %49 = arith.mulf %48, %4 : vector<1x25xf32>
    %50 = vector.broadcast %20 : f32 to vector<1x25xf32>
    %51 = arith.mulf %50, %6 : vector<1x25xf32>
    %52 = arith.addf %49, %51 : vector<1x25xf32>
    %53 = vector.broadcast %21 : f32 to vector<1x25xf32>
    %54 = arith.mulf %53, %8 : vector<1x25xf32>
    %55 = arith.addf %52, %54 : vector<1x25xf32>
    %56 = vector.broadcast %24 : f32 to vector<1x25xf32>
    %57 = arith.addf %55, %56 : vector<1x25xf32>
    %58 = tpu.reciprocal %57 {approx = true} : vector<1x25xf32> -> vector<1x25xf32>
    %59 = arith.mulf %57, %58 : vector<1x25xf32>
    %cst_15 = arith.constant 2.000000e+00 : f32
    %60 = vector.broadcast %cst_15 : f32 to vector<1x25xf32>
    %61 = arith.subf %60, %59 : vector<1x25xf32>
    %62 = arith.mulf %58, %61 : vector<1x25xf32>
    %63 = vector.broadcast %0 : f32 to vector<1x25xf32>
    %64 = arith.mulf %63, %37 : vector<1x25xf32>
    %65 = arith.mulf %64, %62 : vector<1x25xf32>
    %66 = vector.broadcast %25 : f32 to vector<1x25xf32>
    %67 = arith.addf %65, %66 : vector<1x25xf32>
    %68 = vector.broadcast %0 : f32 to vector<1x25xf32>
    %69 = arith.mulf %68, %47 : vector<1x25xf32>
    %70 = arith.mulf %69, %62 : vector<1x25xf32>
    %71 = vector.broadcast %26 : f32 to vector<1x25xf32>
    %72 = arith.addf %70, %71 : vector<1x25xf32>
    %73 = arith.subf %10, %67 : vector<1x25xf32>
    %74 = arith.subf %12, %72 : vector<1x25xf32>
    %75 = arith.mulf %73, %73 : vector<1x25xf32>
    %76 = arith.addf %2, %75 : vector<1x25xf32>
    %77 = arith.mulf %74, %74 : vector<1x25xf32>
    %78 = arith.addf %76, %77 : vector<1x25xf32>
    %79 = arith.subf %24, %27 : f32
    %80 = arith.mulf %79, %79 : f32
    %cst_16 = arith.constant 0.000000e+00 : f32
    %81 = arith.addf %cst_16, %80 : f32
    %c1_17 = arith.constant 1 : index
    %c0_18 = arith.constant 0 : index
    %c0_19 = arith.constant 0 : index
    %82 = vector.load %arg1[%c1_17, %c0_18, %c0_19] : memref<2x6x25xf32, #tpu.memory_space<vmem>>, vector<1x1x25xf32>
    %83 = vector.shape_cast %82 : vector<1x1x25xf32> to vector<1x25xf32>
    %c1_20 = arith.constant 1 : index
    %c1_21 = arith.constant 1 : index
    %c0_22 = arith.constant 0 : index
    %84 = vector.load %arg1[%c1_20, %c1_21, %c0_22] : memref<2x6x25xf32, #tpu.memory_space<vmem>>, vector<1x1x25xf32>
    %85 = vector.shape_cast %84 : vector<1x1x25xf32> to vector<1x25xf32>
    %c1_23 = arith.constant 1 : index
    %c2_24 = arith.constant 2 : index
    %c0_25 = arith.constant 0 : index
    %86 = vector.load %arg1[%c1_23, %c2_24, %c0_25] : memref<2x6x25xf32, #tpu.memory_space<vmem>>, vector<1x1x25xf32>
    %87 = vector.shape_cast %86 : vector<1x1x25xf32> to vector<1x25xf32>
    %c1_26 = arith.constant 1 : index
    %c3_27 = arith.constant 3 : index
    %c0_28 = arith.constant 0 : index
    %88 = vector.load %arg1[%c1_26, %c3_27, %c0_28] : memref<2x6x25xf32, #tpu.memory_space<vmem>>, vector<1x1x25xf32>
    %89 = vector.shape_cast %88 : vector<1x1x25xf32> to vector<1x25xf32>
    %c1_29 = arith.constant 1 : index
    %c4_30 = arith.constant 4 : index
    %c0_31 = arith.constant 0 : index
    %90 = vector.load %arg1[%c1_29, %c4_30, %c0_31] : memref<2x6x25xf32, #tpu.memory_space<vmem>>, vector<1x1x25xf32>
    %91 = vector.shape_cast %90 : vector<1x1x25xf32> to vector<1x25xf32>
    %c9 = arith.constant 9 : index
    %92 = memref.load %arg0[%c9] : memref<32xf32, #tpu.memory_space<smem>>
    %c10 = arith.constant 10 : index
    %93 = memref.load %arg0[%c10] : memref<32xf32, #tpu.memory_space<smem>>
    %c11 = arith.constant 11 : index
    %94 = memref.load %arg0[%c11] : memref<32xf32, #tpu.memory_space<smem>>
    %c12 = arith.constant 12 : index
    %95 = memref.load %arg0[%c12] : memref<32xf32, #tpu.memory_space<smem>>
    %c13 = arith.constant 13 : index
    %96 = memref.load %arg0[%c13] : memref<32xf32, #tpu.memory_space<smem>>
    %c14 = arith.constant 14 : index
    %97 = memref.load %arg0[%c14] : memref<32xf32, #tpu.memory_space<smem>>
    %c15 = arith.constant 15 : index
    %98 = memref.load %arg0[%c15] : memref<32xf32, #tpu.memory_space<smem>>
    %c16 = arith.constant 16 : index
    %99 = memref.load %arg0[%c16] : memref<32xf32, #tpu.memory_space<smem>>
    %c17 = arith.constant 17 : index
    %100 = memref.load %arg0[%c17] : memref<32xf32, #tpu.memory_space<smem>>
    %c21 = arith.constant 21 : index
    %101 = memref.load %arg0[%c21] : memref<32xf32, #tpu.memory_space<smem>>
    %c22 = arith.constant 22 : index
    %102 = memref.load %arg0[%c22] : memref<32xf32, #tpu.memory_space<smem>>
    %c23 = arith.constant 23 : index
    %103 = memref.load %arg0[%c23] : memref<32xf32, #tpu.memory_space<smem>>
    %c26 = arith.constant 26 : index
    %104 = memref.load %arg0[%c26] : memref<32xf32, #tpu.memory_space<smem>>
    %c27 = arith.constant 27 : index
    %105 = memref.load %arg0[%c27] : memref<32xf32, #tpu.memory_space<smem>>
    %c29 = arith.constant 29 : index
    %106 = memref.load %arg0[%c29] : memref<32xf32, #tpu.memory_space<smem>>
    %107 = vector.broadcast %92 : f32 to vector<1x25xf32>
    %108 = arith.mulf %107, %83 : vector<1x25xf32>
    %109 = vector.broadcast %93 : f32 to vector<1x25xf32>
    %110 = arith.mulf %109, %85 : vector<1x25xf32>
    %111 = arith.addf %108, %110 : vector<1x25xf32>
    %112 = vector.broadcast %94 : f32 to vector<1x25xf32>
    %113 = arith.mulf %112, %87 : vector<1x25xf32>
    %114 = arith.addf %111, %113 : vector<1x25xf32>
    %115 = vector.broadcast %101 : f32 to vector<1x25xf32>
    %116 = arith.addf %114, %115 : vector<1x25xf32>
    %117 = vector.broadcast %95 : f32 to vector<1x25xf32>
    %118 = arith.mulf %117, %83 : vector<1x25xf32>
    %119 = vector.broadcast %96 : f32 to vector<1x25xf32>
    %120 = arith.mulf %119, %85 : vector<1x25xf32>
    %121 = arith.addf %118, %120 : vector<1x25xf32>
    %122 = vector.broadcast %97 : f32 to vector<1x25xf32>
    %123 = arith.mulf %122, %87 : vector<1x25xf32>
    %124 = arith.addf %121, %123 : vector<1x25xf32>
    %125 = vector.broadcast %102 : f32 to vector<1x25xf32>
    %126 = arith.addf %124, %125 : vector<1x25xf32>
    %127 = vector.broadcast %98 : f32 to vector<1x25xf32>
    %128 = arith.mulf %127, %83 : vector<1x25xf32>
    %129 = vector.broadcast %99 : f32 to vector<1x25xf32>
    %130 = arith.mulf %129, %85 : vector<1x25xf32>
    %131 = arith.addf %128, %130 : vector<1x25xf32>
    %132 = vector.broadcast %100 : f32 to vector<1x25xf32>
    %133 = arith.mulf %132, %87 : vector<1x25xf32>
    %134 = arith.addf %131, %133 : vector<1x25xf32>
    %135 = vector.broadcast %103 : f32 to vector<1x25xf32>
    %136 = arith.addf %134, %135 : vector<1x25xf32>
    %137 = tpu.reciprocal %136 {approx = true} : vector<1x25xf32> -> vector<1x25xf32>
    %138 = arith.mulf %136, %137 : vector<1x25xf32>
    %cst_32 = arith.constant 2.000000e+00 : f32
    %139 = vector.broadcast %cst_32 : f32 to vector<1x25xf32>
    %140 = arith.subf %139, %138 : vector<1x25xf32>
    %141 = arith.mulf %137, %140 : vector<1x25xf32>
    %142 = vector.broadcast %0 : f32 to vector<1x25xf32>
    %143 = arith.mulf %142, %116 : vector<1x25xf32>
    %144 = arith.mulf %143, %141 : vector<1x25xf32>
    %145 = vector.broadcast %104 : f32 to vector<1x25xf32>
    %146 = arith.addf %144, %145 : vector<1x25xf32>
    %147 = vector.broadcast %0 : f32 to vector<1x25xf32>
    %148 = arith.mulf %147, %126 : vector<1x25xf32>
    %149 = arith.mulf %148, %141 : vector<1x25xf32>
    %150 = vector.broadcast %105 : f32 to vector<1x25xf32>
    %151 = arith.addf %149, %150 : vector<1x25xf32>
    %152 = arith.subf %89, %146 : vector<1x25xf32>
    %153 = arith.subf %91, %151 : vector<1x25xf32>
    %154 = arith.mulf %152, %152 : vector<1x25xf32>
    %155 = arith.addf %78, %154 : vector<1x25xf32>
    %156 = arith.mulf %153, %153 : vector<1x25xf32>
    %157 = arith.addf %155, %156 : vector<1x25xf32>
    %158 = arith.subf %103, %106 : f32
    %159 = arith.mulf %158, %158 : f32
    %160 = arith.addf %81, %159 : f32
    %c0_33 = arith.constant 0 : index
    %c5_34 = arith.constant 5 : index
    %c0_35 = arith.constant 0 : index
    %161 = vector.load %arg1[%c0_33, %c5_34, %c0_35] : memref<2x6x25xf32, #tpu.memory_space<vmem>>, vector<1x1x25xf32>
    %162 = vector.shape_cast %161 : vector<1x1x25xf32> to vector<1x25xf32>
    %163 = arith.mulf %157, %162 : vector<1x25xf32>
    %164 = vector.shape_cast %163 : vector<1x25xf32> to vector<1x1x25xf32>
    %cst_36 = arith.constant dense<0.000000e+00> : vector<1xf32>
    %165 = vector.multi_reduction <add>, %164, %cst_36 [1, 2] : vector<1x1x25xf32> to vector<1xf32>
    %166 = vector.shape_cast %165 : vector<1xf32> to vector<1x1x1xf32>
    %167 = vector.extract %166[0, 0, 0] : f32 from vector<1x1x1xf32>
    %168 = arith.mulf %160, %1 : f32
    %169 = arith.addf %167, %168 : f32
    %c0_37 = arith.constant 0 : index
    %c0_38 = arith.constant 0 : index
    %170 = memref.load %arg2[%c0_37, %c0_38] : memref<1x3xf32, #tpu.memory_space<smem>>
    memref.store %169, %arg2[%c0_37, %c0_38] : memref<1x3xf32, #tpu.memory_space<smem>>
    %c0_39 = arith.constant 0 : index
    %c1_40 = arith.constant 1 : index
    %171 = memref.load %arg2[%c0_39, %c1_40] : memref<1x3xf32, #tpu.memory_space<smem>>
    memref.store %167, %arg2[%c0_39, %c1_40] : memref<1x3xf32, #tpu.memory_space<smem>>
    %c0_41 = arith.constant 0 : index
    %c2_42 = arith.constant 2 : index
    %172 = memref.load %arg2[%c0_41, %c2_42] : memref<1x3xf32, #tpu.memory_space<smem>>
    memref.store %168, %arg2[%c0_41, %c2_42] : memref<1x3xf32, #tpu.memory_space<smem>>
    return
  }
}

</mosaic_0001>

<bundles_post_ra>
// kernel: smplify_camera_init_loss.1
= control target key start
LH: loop header
LB: loop body
LE: loop exit
PB: predicated region body
PF: predicated region fallthrough
CT: control target
= control target key end

     0   :  { %7 = vsyncpa [#allocation3], 0  ;;  %s404_s0 = inlined_call_operand.vmem [shape: f32[32], index: 0, kind: input, shape index: {}]   ;;  %s405_s1 = inlined_call_operand.vmem [shape: f32[2,6,25], index: 1, kind: input, shape index: {}]   ;;  %s406_s2 = inlined_call_operand.vmem [shape: f32[1,3], index: 2, kind: output, shape index: {}]  }
   0x1   :  { %8 = vsyncpa [#allocation4], 0  ;;  %s15_s11 = sshll.u32 %s404_s0, 4  ;;  %s16_s11 = int_to_ptr.vmem [resolvable:$true] %s15_s11 }
   0x2   :  { %s252_s12 = scalar_lea.vmem %s16_s11, 16  ;;  %p257_p1 = scmp.lt.s32.totalorder %s16_s11, %s16_s11 }
   0x3   :  { %p253_p0 = scmp.ne.s32.totalorder %s16_s11, %s252_s12  ;;  %p258_p2 = scmp.lt.s32.totalorder %s252_s12, %s252_s12 }
   0x5   :  { %p259_p3 = por %p258_p2, %p257_p1 }
   0x7   :  { %p260_p4 = pnand %p259_p3, %p253_p0 }
   0x9   :  { %263 = shalt.err (!%p260_p4)
}
   0xa   :  { %s280_s13 = smov [#allocation2]  }
   0xb   :  { %18 = dma.vmem_to_smem %s16_s11, 16, %s280_s13, [#allocation3]  }
   0xc   :  { %276 = dma.done.wait [#allocation3], 16  }
   0xd   :  { %277 = vsyncadd [#allocation3], 4294967280 }
   0xe   :  { %24 = sfence }
   0xf   :  { %s300_s14 = sld [smem:[#allocation2]]  ;;  %s215_s15 = sld [smem:[#allocation2 + $0x6]]  ;;  %v27_v0 = vld [vmem:[%s405_s1] sm:$0x1]  ;;  %v28_v1 = vld [vmem:[%s405_s1 + $0x1] sm:$0x1] }
  0x10   :  { %s216_s16 = sld [smem:[#allocation2 + $0x7]]  ;;  %s302_s17 = sld [smem:[#allocation2 + $0x1]]  ;;  %v29_v2 = vld [vmem:[%s405_s1 + $0x2] sm:$0x1]  ;;  %v224_v21 = vld [vmem:[%s405_s1 + $0x8] sm:$0x1] }
  0x11   :  { %s217_s0 = sld [smem:[#allocation2 + $0x8]]  ;;  %s304_s18 = sld [smem:[#allocation2 + $0x3]]  ;;  %v225_v24 = vld [vmem:[%s405_s1 + $0x9] sm:$0x1]  ;;  %v226_v26 = vld [vmem:[%s405_s1 + $0xa] sm:$0x1] }
  0x12   :  { %s306_s19 = sld [smem:[#allocation2 + $0x4]]  ;;  %s313_s23 = sld [smem:[#allocation2 + $0x2]]  ;;  %vm173_vm0 = vcmask 196608  }
  0x13   :  { %s308_s20 = sld [smem:[#allocation2 + $0x14]]  ;;  %s321_s28 = sld [smem:[#allocation2 + $0x5]] }
  0x14   :  { %s323_s29 = sld [smem:[#allocation2 + $0xf]]  ;;  %s325_s30 = sld [smem:[#allocation2 + $0x10]] }
  0x15   :  { %v67_v3 = vstv %s215_s15  ;;  %v47_v8 = vstv %s300_s14  ;;  %s329_s3 = sld [smem:[#allocation2 + $0x11]]  ;;  %s335_s5 = sld [smem:[#allocation2 + $0xa]] }
  0x16   :  { %v68_v4 = vmul.f32 %v67_v3, %v27_v0  ;;  %v69_v5 = vstv %s216_s16  ;;  %v49_v9 = vstv %s302_s17  ;;  %s333_s4 = sld [smem:[#allocation2 + $0x9]]  ;;  %s338_s6 = sld [smem:[#allocation2 + $0xc]]  ;;  %v48_v15 = vmul.f32 %v47_v8, %v27_v0 }
  0x17   :  { %v72_v6 = vstv %s217_s0  ;;  %v70_v7 = vmul.f32 %v69_v5, %v28_v1  ;;  %v57_v11 = vstv %s304_s18  ;;  %s340_s7 = sld [smem:[#allocation2 + $0xd]]  ;;  %s342_s8 = sld [smem:[#allocation2 + $0x12]]  ;;  %v50_v16 = vmul.f32 %v49_v9, %v28_v1 }
  0x18   :  { %v73_v10 = vmul.f32 %v72_v6, %v29_v2  ;;  %v59_v12 = vstv %s306_s19  ;;  %v52_v17 = vstv %s313_s23  ;;  %s345_s9 = sld [smem:[#allocation2 + $0x17]]  ;;  %v58_v19 = vmul.f32 %v57_v11, %v27_v0  ;;  %s350_s12 = sld [smem:[#allocation2 + $0x13]] }
  0x19   :  { %v71_v13 = vadd.f32 %v70_v7, %v68_v4  ;;  %v75_v14 = vstv %s308_s20  ;;  %v60_v20 = vmul.f32 %v59_v12, %v28_v1  ;;  %v62_v22 = vstv %s321_s28  ;;  %s356_s15 = sld [smem:[#allocation2 + $0xb]]  ;;  %s361_s0 = sld [smem:[#allocation2 + $0xe]] }
  0x1a   :  { %v53_v25 = vmul.f32 %v52_v17, %v29_v2  ;;  %v140_v27 = vstv %s323_s29  ;;  %v51_v28 = vadd.f32 %v50_v16, %v48_v15  ;;  %v142_v30 = vstv %s325_s30  ;;  %s208_s18 = sld [smem:[#allocation2 + $0x1e]]  ;;  %s373_s19 = sld [smem:[#allocation2 + $0x15]]  ;;  %v31_v15 = vld [vmem:[%s405_s1 + $0x4] sm:$0x1] }
  0x1b   :  { %v74_v18 = vadd.f32 %v73_v10, %v71_v13  ;;  %v141_v29 = vmul.f32 %v224_v21, %v140_v27  ;;  %v61_v31 = vadd.f32 %v60_v20, %v58_v19  ;;  %v63_v32 = vmul.f32 %v62_v22, %v29_v2  ;;  %s239_s21 = sld [smem:[#allocation2 + $0x16]]  ;;  %s377_s22 = sld [smem:[#allocation2 + $0x18]] }
  0x1c   :  { %v143_v33 = vmul.f32 %v225_v24, %v142_v30  ;;  %v145_v34 = vstv %s329_s3  ;;  %v120_v35 = vstv %s333_s4  ;;  %v122_v36 = vstv %s335_s5  ;;  %s379_s23 = sld [smem:[#allocation2 + $0x19]]  ;;  %s241_s24 = sld [smem:[#allocation2 + $0x1a]] }
  0x1d   :  { %v76_v23 = vadd.f32 %v75_v14, %v74_v18  ;;  %v146_v37 = vmul.f32 %v226_v26, %v145_v34  ;;  %v130_v38 = vstv %s338_s6  ;;  %v132_v39 = vstv %s340_s7  ;;  %s242_s25 = sld [smem:[#allocation2 + $0x1b]]  ;;  %v30_v14 = vld [vmem:[%s405_s1 + $0x3] sm:$0x1]  ;;  %s243_s10 = sld [smem:[#allocation2 + $0x1d]] }
  0x1e   :  { %v144_v40 = vadd.f32 %v143_v33, %v141_v29  ;;  %v54_v41 = vadd.f32 %v53_v25, %v51_v28  ;;  %v55_v42 = vstv %s342_s8  ;;  %v148_v43 = vstv %s345_s9  ;;  %s223_s8 = sld [smem:[#allocation2 + $0x1c]]  ;;  %s209_s14 = sld [smem:[#allocation2 + $0x1f]] }
  0x1f   :  { %248 = vrcp.f32 %v76_v23  ;;  %v64_v44 = vadd.f32 %v63_v32, %v61_v31  ;;  %v121_v45 = vmul.f32 %v224_v21, %v120_v35  ;;  %v123_v46 = vmul.f32 %v225_v24, %v122_v36  ;;  %v227_v31 = vld [vmem:[%s405_s1 + $0xb] sm:$0x1]  ;;  %v228_v32 = vld [vmem:[%s405_s1 + $0xc] sm:$0x1] }
  0x20   :  { %v147_v47 = vadd.f32 %v146_v37, %v144_v40  ;;  %v65_v48 = vstv %s350_s12  ;;  %v125_v49 = vstv %s356_s15  ;;  %v131_v50 = vmul.f32 %v224_v21, %v130_v38 }
  0x21   :  { %v133_v51 = vmul.f32 %v225_v24, %v132_v39  ;;  %v135_v52 = vstv %s361_s0  ;;  %v56_v54 = vadd.f32 %v55_v42, %v54_v41  ;;  %v66_v55 = vadd.f32 %v65_v48, %v64_v44  ;;  %v171_v41 = vld [vmem:[%s405_s1 + $0x5] sm:$0x1] }
  0x22   :  { %v149_v53 = vadd.f32 %v148_v43, %v147_v47  ;;  %v124_v56 = vadd.f32 %v123_v46, %v121_v45  ;;  %v126_v57 = vmul.f32 %v226_v26, %v125_v49  ;;  %v81_v59 = vstv %s208_s18  ;;  %s198_s18 = sshll.u32 %s406_s2, 4  ;;  %s199_s18 = int_to_ptr.vmem [resolvable:$true] %s198_s18 }
  0x23   :  { %v134_v60 = vadd.f32 %v133_v51, %v131_v50  ;;  %v136_v61 = vmul.f32 %v226_v26, %v135_v52  ;;  %v82_v0 = vmul.f32 %v81_v59, %v56_v54  ;;  %v86_v1 = vmul.f32 %v81_v59, %v66_v55  ;;  %s168_s12 = ssub.f32 %s345_s9, %s243_s10  ;;  %p269_p6 = scmp.lt.s32.totalorder %s199_s18, %s199_s18 }
  0x24   :  { %250 = vrcp.f32 %v149_v53  ;;  %v127_v2 = vadd.f32 %v126_v57, %v124_v56  ;;  %v128_v3 = vstv %s373_s19  ;;  %v138_v6 = vstv %s239_s21  ;;  %s96_s11 = ssub.f32 %s308_s20, %s223_s8  ;;  %s264_s19 = scalar_lea.vmem %s199_s18, 16 }
  0x25   :  { %v137_v4 = vadd.f32 %v136_v61, %v134_v60  ;;  %v84_v7 = vstv %s377_s22  ;;  %v88_v8 = vstv %s379_s23  ;;  %v156_v25 = vstv %s241_s24  ;;  %s169_s15 = smul.f32 %s168_s12, %s168_s12  ;;  %p265_p5 = scmp.ne.s32.totalorder %s199_s18, %s264_s19 }
  0x26   :  { %v129_v11 = vadd.f32 %v128_v3, %v127_v2  ;;  %v160_v26 = vstv %s242_s25  ;;  %s97_s13 = smul.f32 %s96_s11, %s96_s11  ;;  %p270_p7 = scmp.lt.s32.totalorder %s264_s19, %s264_s19 }
  0x27   :  { %v139_v12 = vadd.f32 %v138_v6, %v137_v4 }
  0x28   :  { %v154_v19 = vmul.f32 %v129_v11, %v81_v59  ;;  %s170_s16 = sadd.f32 %s169_s15, %s97_s13  ;;  %p271_p8 = por %p270_p7, %p269_p6 }
  0x29   :  { %v249_v58 = vpop.eup %248 }
  0x2a   :  { %v78_v62 = vmul.f32 %v249_v58, %v76_v23  ;;  %v158_v23 = vmul.f32 %v139_v12, %v81_v59  ;;  %s184_s17 = smul.f32 %s209_s14, %s170_s16  ;;  %p272_p9 = pnand %p271_p8, %p265_p5 }
  0x2c   :  { %v79_v63 = vsub.f32 2.0, %v78_v62  ;;  %191 = sst [smem:[#allocation5 + $0x2]] %s184_s17 }
  0x2e   :  { %v80_v5 = vmul.f32 %v249_v58, %v79_v63  ;;  %v251_v13 = vpop.eup %250 }
  0x2f   :  { %v151_v18 = vmul.f32 %v251_v13, %v149_v53 }
  0x30   :  { %v83_v9 = vmul.f32 %v82_v0, %v80_v5  ;;  %v87_v10 = vmul.f32 %v86_v1, %v80_v5 }
  0x31   :  { %v152_v22 = vsub.f32 2.0, %v151_v18 }
  0x32   :  { %v85_v16 = vadd.f32 %v84_v7, %v83_v9  ;;  %v89_v17 = vadd.f32 %v88_v8, %v87_v10 }
  0x33   :  { %v153_v24 = vmul.f32 %v251_v13, %v152_v22 }
  0x34   :  { %v90_v20 = vsub.f32 %v30_v14, %v85_v16  ;;  %v91_v21 = vsub.f32 %v31_v15, %v89_v17 }
  0x35   :  { %v155_v29 = vmul.f32 %v154_v19, %v153_v24  ;;  %v159_v30 = vmul.f32 %v158_v23, %v153_v24 }
  0x36   :  { %v92_v27 = vmul.f32 %v90_v20, %v90_v20  ;;  %v94_v28 = vmul.f32 %v91_v21, %v91_v21 }
  0x37   :  { %v157_v33 = vadd.f32 %v156_v25, %v155_v29  ;;  %v161_v34 = vadd.f32 %v160_v26, %v159_v30 }
  0x38   :  { %v95_v35 = vadd.f32 %v94_v28, %v92_v27 }
  0x39   :  { %v162_v36 = vsub.f32 %v227_v31, %v157_v33  ;;  %v163_v37 = vsub.f32 %v228_v32, %v161_v34 }
  0x3b   :  { %v164_v38 = vmul.f32 %v162_v36, %v162_v36  ;;  %v166_v39 = vmul.f32 %v163_v37, %v163_v37 }
  0x3d   :  { %v165_v40 = vadd.f32 %v164_v38, %v95_v35 }
  0x3f   :  { %v167_v42 = vadd.f32 %v166_v39, %v165_v40 }
  0x41   :  { %v172_v43 = vmul.f32 %v171_v41, %v167_v42 }
  0x43   :  { %v174_v44 = vsel %vm173_vm0, %v172_v43, 0.0 }
  0x44   :  { %175 = vadd.xlane.f32.xlu0 %v174_v44 }
  0xd1   :  { %v176_v45 = vpop.xlane.xlu0 %175 }
  0xd2   :  { %v177_v46 = vrot.slane %v176_v45, 4 }
  0xd4   :  { %v178_v47 = vadd.f32 %v177_v46, %v176_v45 }
  0xd6   :  { %v179_v48 = vrot.slane %v178_v47, 2 }
  0xd8   :  { %v180_v49 = vadd.f32 %v179_v48, %v178_v47 }
  0xda   :  { %v181_v50 = vrot.slane %v180_v49, 1 }
  0xdc   :  { %v182_v51 = vadd.f32 %v181_v50, %v180_v49 }
  0xde   :  { %244 = vpush %v182_v51 }
 0x10f   :  { %s245_s20 = spop %244 }
 0x110   :  { %s185_s9 = sadd.f32 %s245_s20, %s184_s17 }
 0x111   :  { %189 = sst [smem:[#allocation5 + $0x1]] %s245_s20 }
 0x112   :  { %187 = sst [smem:[#allocation5]] %s185_s9 }
 0x113   :  { %275 = shalt.err (!%p272_p9)
}
 0x114   :  { %s281_s21 = smov [#allocation5]  }
 0x115   :  { %201 = dma.smem_to_vmem %s281_s21, 16, %s199_s18, [#allocation4]  }
 0x116   :  { %278 = dma.done.wait [#allocation4], 16  }
 0x117   :  { %279 = vsyncadd [#allocation4], 4294967280 }
 0x118   :  { %205 = sfence }
 0x119   :  { %206 = vsyncpa [#allocation3], 1 }
 0x11a   :  { %207 = vsyncpa [#allocation4], 1 }

</bundles_post_ra>
